<compile_context>
chip_gen: v7x
topology: tpu7x:2x2x1
jax: 0.10.0
libtpu: 0.0.40
codegen_flags: <defaults>
</compile_context>

<pallas_src>
import jax
import jax.numpy as jnp
from jax.experimental import pallas as pl
from jax.experimental.pallas import tpu as pltpu


LANE = 128      # TPU lane width
ROW_ALIGN = 16  # bf16 packs 16 rows/vreg; keep batch tiles 16-aligned


def _round_up(x, m):
    return ((x + m - 1) // m) * m


def mlp_kernel(x_ref, w1_ref, b1_ref, w2_ref, b2_ref, o_ref):
    # x arrives as f32 (read once from HBM); cast to bf16 in-register for MXU.
    x = x_ref[...].astype(jnp.bfloat16)
    # fc1: [TB, H](bf16) @ [H, 256](bf16) -> f32 accumulation on the MXU.
    h = jnp.dot(x, w1_ref[...], preferred_element_type=jnp.float32)
    h = jnp.maximum(h + b1_ref[...], 0.0)          # bias + ReLU in f32 (VPU)
    # fc2: bf16 x bf16 with f32 accumulation (single MXU pass, no W2 upcast).
    out = jnp.dot(h.astype(jnp.bfloat16), w2_ref[...],
                  preferred_element_type=jnp.float32)
    o_ref[...] = (out + b2_ref[...]).astype(o_ref.dtype)


def prepare_params(w1, b1, w2, b2):
    """One-time weight prep (bf16 cast + lane padding). Do NOT call per step."""
    H, F1 = w1.shape
    F1b, C = w2.shape
    assert F1b == F1
    assert H % LANE == 0 and F1 % LANE == 0
    C_pad = _round_up(C, LANE)  # lane-dense padded class dim (unmasked stores)
    return {
        "w1": w1.astype(jnp.bfloat16),
        "b1": b1.reshape(1, F1).astype(jnp.float32),
        "w2": jnp.pad(w2.astype(jnp.bfloat16), ((0, 0), (0, C_pad - C))),
        "b2": jnp.pad(b2.reshape(1, C).astype(jnp.float32),
                      ((0, 0), (0, C_pad - C))),
        "num_classes": C,
    }


def audio_classifier_forward(features, params, *, core_parallel=False):
    """features: [B, H] f32. Returns logits [B, C] f32.

    Matches torch: relu(features @ W1 + b1) @ W2 + b2 (bf16 operands,
    f32 accumulation).
    """
    B, H = features.shape
    w1_bf, b1_2d = params["w1"], params["b1"]
    w2_bf, b2_2d = params["w2"], params["b2"]
    C = params["num_classes"]
    F1 = w1_bf.shape[1]
    C_pad = w2_bf.shape[1]
    assert w1_bf.shape[0] == H

    # Batch tiling: up to 512 rows/tile (HBM-bound kernel likes big tiles),
    # 16-row alignment so small-B tiles still map to clean bf16 vreg packing.
    TB = min(512, _round_up(B, ROW_ALIGN))
    grid = (pl.cdiv(B, TB),)  # ragged tail block handled (masked) by Pallas

    # v7x only: CORE_PARALLEL splits batch tiles across both TensorCores
    # (only matters when grid[0] >= 2).
    sem = (pltpu.CORE_PARALLEL,) if (core_parallel and grid[0] >= 2) \
        else (pltpu.PARALLEL,)

    flops = 2 * B * H * F1 + 2 * B * F1 * C_pad
    bytes_accessed = (B * H * 4            # x read once as f32
                      + w1_bf.size * 2 + w2_bf.size * 2
                      + b1_2d.size * 4 + b2_2d.size * 4
                      + B * C_pad * 4)     # padded f32 logits writeback

    out = pl.pallas_call(
        mlp_kernel,
        out_shape=jax.ShapeDtypeStruct((B, C_pad), jnp.float32),
        grid_spec=pl.GridSpec(
            grid=grid,
            in_specs=[
                pl.BlockSpec((TB, H), lambda i: (i, 0)),      # batch-tiled x
                pl.BlockSpec((H, F1), lambda i: (0, 0)),      # W1 VMEM-resident
                pl.BlockSpec((1, F1), lambda i: (0, 0)),      # b1 VMEM-resident
                pl.BlockSpec((F1, C_pad), lambda i: (0, 0)),  # W2 VMEM-resident
                pl.BlockSpec((1, C_pad), lambda i: (0, 0)),   # b2 VMEM-resident
            ],
            out_specs=pl.BlockSpec((TB, C_pad), lambda i: (i, 0)),
        ),
        compiler_params=pltpu.CompilerParams(dimension_semantics=sem),
        cost_estimate=pl.CostEstimate(
            flops=flops, transcendentals=0, bytes_accessed=bytes_accessed),
    )(features.astype(jnp.float32), w1_bf, b1_2d, w2_bf, b2_2d)

    # Strip the lane padding on the class dim only (batch is never padded).
    return out[:, :C]


def init_params(key, hidden_size=768, num_classes=2):
    """PyTorch-style init: U(-1/sqrt(fan_in), 1/sqrt(fan_in)).

    Weights are stored transposed vs torch's [out, in] so the kernel computes
    x @ W directly.
    """
    k1, k2, k3, k4 = jax.random.split(key, 4)
    bound1 = 1.0 / jnp.sqrt(hidden_size)
    bound2 = 1.0 / jnp.sqrt(256.0)
    w1 = jax.random.uniform(k1, (hidden_size, 256), jnp.float32, -bound1, bound1)
    b1 = jax.random.uniform(k2, (256,), jnp.float32, -bound1, bound1)
    w2 = jax.random.uniform(k3, (256, num_classes), jnp.float32, -bound2, bound2)
    b2 = jax.random.uniform(k4, (num_classes,), jnp.float32, -bound2, bound2)
    return w1, b1, w2, b2


if __name__ == "__main__":
    key = jax.random.PRNGKey(0)
    kx, kp = jax.random.split(key)

    B, H, C = 2, 768, 2
    features = jax.random.normal(kx, (B, H), jnp.float32)
    w1, b1, w2, b2 = init_params(kp, hidden_size=H, num_classes=C)

    params = prepare_params(w1, b1, w2, b2)      # one-time weight prep
    logits = audio_classifier_forward(features, params)
    logits = jax.block_until_ready(logits)
    assert logits.shape == (B, C)

    # Reference mirrors the kernel's rounding: bf16 x/W1/W2 and bf16 h for
    # the second matmul, f32 accumulation throughout.
    xf = features.astype(jnp.bfloat16).astype(jnp.float32)
    w1f = w1.astype(jnp.bfloat16).astype(jnp.float32)
    w2f = w2.astype(jnp.bfloat16).astype(jnp.float32)
    h_ref = jnp.maximum(xf @ w1f + b1, 0.0)
    h_ref = h_ref.astype(jnp.bfloat16).astype(jnp.float32)
    ref = h_ref @ w2f + b2
    assert jnp.allclose(logits, ref, atol=2e-3, rtol=2e-3), "mismatch vs reference"

    print("KERNEL_OK")
</pallas_src>

<mosaic_0001>
module attributes {stable_mosaic.version = 11 : i64} {
  func.func @mlp_kernel(%arg0: i32, %arg1: memref<16x768xf32, #tpu.memory_space<vmem>>, %arg2: memref<768x256xbf16, #tpu.memory_space<vmem>>, %arg3: memref<1x256xf32, #tpu.memory_space<vmem>>, %arg4: memref<256x128xbf16, #tpu.memory_space<vmem>>, %arg5: memref<1x128xf32, #tpu.memory_space<vmem>>, %arg6: memref<16x128xf32, #tpu.memory_space<vmem>>) attributes {dimension_semantics = [#tpu.dimension_semantics<parallel>], iteration_bounds = array<i64: 1>, scalar_prefetch = 0 : i64, scratch_operands = 0 : i64, tpu.core_type = #tpu.core_type<tc>, window_params = [{transform_indices = @transform_0, window_bounds = array<i64: 16, 768>}, {pipeline_mode = #tpu.pipeline_mode<synchronous>, transform_indices = @transform_1, window_bounds = array<i64: 768, 256>}, {pipeline_mode = #tpu.pipeline_mode<synchronous>, transform_indices = @transform_2, window_bounds = array<i64: 1, 256>}, {pipeline_mode = #tpu.pipeline_mode<synchronous>, transform_indices = @transform_3, window_bounds = array<i64: 256, 128>}, {pipeline_mode = #tpu.pipeline_mode<synchronous>, transform_indices = @transform_4, window_bounds = array<i64: 1, 128>}, {transform_indices = @transform_5, window_bounds = array<i64: 16, 128>}]} {
    %c0 = arith.constant 0 : index
    %c0_0 = arith.constant 0 : index
    %0 = vector.load %arg1[%c0, %c0_0] : memref<16x768xf32, #tpu.memory_space<vmem>>, vector<16x768xf32>
    %1 = arith.truncf %0 : vector<16x768xf32> to vector<16x768xbf16>
    %c0_1 = arith.constant 0 : index
    %c0_2 = arith.constant 0 : index
    %2 = vector.load %arg2[%c0_1, %c0_2] : memref<768x256xbf16, #tpu.memory_space<vmem>>, vector<768x256xbf16>
    %cst = arith.constant dense<0.000000e+00> : vector<16x256xf32>
    %3 = tpu.matmul %1, %2, %cst {dimension_numbers = #tpu.dot_dimension_numbers<[1], [0], [0], [1], [0, 0, 1, 1], [], []>} : vector<16x768xbf16>, vector<768x256xbf16>, vector<16x256xf32> -> vector<16x256xf32>
    %c0_3 = arith.constant 0 : index
    %c0_4 = arith.constant 0 : index
    %4 = vector.load %arg3[%c0_3, %c0_4] : memref<1x256xf32, #tpu.memory_space<vmem>>, vector<1x256xf32>
    %5 = vector.broadcast %4 : vector<1x256xf32> to vector<16x256xf32>
    %6 = arith.addf %3, %5 : vector<16x256xf32>
    %cst_5 = arith.constant 0.000000e+00 : f32
    %7 = vector.broadcast %cst_5 : f32 to vector<16x256xf32>
    %8 = arith.maximumf %6, %7 : vector<16x256xf32>
    %9 = arith.truncf %8 : vector<16x256xf32> to vector<16x256xbf16>
    %c0_6 = arith.constant 0 : index
    %c0_7 = arith.constant 0 : index
    %10 = vector.load %arg4[%c0_6, %c0_7] : memref<256x128xbf16, #tpu.memory_space<vmem>>, vector<256x128xbf16>
    %cst_8 = arith.constant dense<0.000000e+00> : vector<16x128xf32>
    %11 = tpu.matmul %9, %10, %cst_8 {dimension_numbers = #tpu.dot_dimension_numbers<[1], [0], [0], [1], [0, 0, 1, 1], [], []>} : vector<16x256xbf16>, vector<256x128xbf16>, vector<16x128xf32> -> vector<16x128xf32>
    %c0_9 = arith.constant 0 : index
    %c0_10 = arith.constant 0 : index
    %12 = vector.load %arg5[%c0_9, %c0_10] : memref<1x128xf32, #tpu.memory_space<vmem>>, vector<1x128xf32>
    %13 = vector.broadcast %12 : vector<1x128xf32> to vector<16x128xf32>
    %14 = arith.addf %11, %13 : vector<16x128xf32>
    %c0_11 = arith.constant 0 : index
    %c0_12 = arith.constant 0 : index
    %15 = vector.load %arg6[%c0_11, %c0_12] : memref<16x128xf32, #tpu.memory_space<vmem>>, vector<16x128xf32>
    tpu.vector_store %arg6[%c0_11, %c0_12], %14 {strides = array<i32>} : memref<16x128xf32, #tpu.memory_space<vmem>>, vector<16x128xf32>,
    return
  }
  func.func @transform_0(%arg0: i32) -> (i32, i32) {
    %c0_i32 = arith.constant 0 : i32
    %c0_i32_0 = arith.constant 0 : i32
    return %arg0, %c0_i32 : i32, i32
  }
  func.func @transform_1(%arg0: i32) -> (i32, i32) {
    %c0_i32 = arith.constant 0 : i32
    %c0_i32_0 = arith.constant 0 : i32
    %c0_i32_1 = arith.constant 0 : i32
    return %c0_i32, %c0_i32_0 : i32, i32
  }
  func.func @transform_2(%arg0: i32) -> (i32, i32) {
    %c0_i32 = arith.constant 0 : i32
    %c0_i32_0 = arith.constant 0 : i32
    %c0_i32_1 = arith.constant 0 : i32
    return %c0_i32, %c0_i32_0 : i32, i32
  }
  func.func @transform_3(%arg0: i32) -> (i32, i32) {
    %c0_i32 = arith.constant 0 : i32
    %c0_i32_0 = arith.constant 0 : i32
    %c0_i32_1 = arith.constant 0 : i32
    return %c0_i32, %c0_i32_0 : i32, i32
  }
  func.func @transform_4(%arg0: i32) -> (i32, i32) {
    %c0_i32 = arith.constant 0 : i32
    %c0_i32_0 = arith.constant 0 : i32
    %c0_i32_1 = arith.constant 0 : i32
    return %c0_i32, %c0_i32_0 : i32, i32
  }
  func.func @transform_5(%arg0: i32) -> (i32, i32) {
    %c0_i32 = arith.constant 0 : i32
    %c0_i32_0 = arith.constant 0 : i32
    return %arg0, %c0_i32 : i32, i32
  }
}

</mosaic_0001>

<bundles_post_ra>
// kernel: tpu_custom_call.1
= control target key start
LH: loop header
LB: loop body
LE: loop exit
PB: predicated region body
PF: predicated region fallthrough
CT: control target
= control target key end

     0   :  { %10 = vsyncpa [#allocation3], 0  ;;  %s1718_s0 = inlined_call_operand.hbm [shape: f32[2,768], index: 0, kind: input, shape index: {}]   ;;  %s1719_s1 = inlined_call_operand.hbm [shape: bf16[768,256], index: 1, kind: input, shape index: {}]   ;;  %s1720_s2 = inlined_call_operand.vmem [shape: f32[1,256], index: 2, kind: input, shape index: {}]   ;;  %s1721_s3 = inlined_call_operand.hbm [shape: bf16[256,128], index: 3, kind: input, shape index: {}]   ;;  %s1722_s4 = inlined_call_operand.vmem [shape: f32[1,128], index: 4, kind: input, shape index: {}]   ;;  %s1723_s5 = inlined_call_operand.hbm [shape: f32[2,128], index: 5, kind: output, shape index: {}]  }
   0x1   :  { %11 = vsyncpa [#allocation6], 0 }
   0x2   :  { %12 = vsyncpa [#allocation4], 0 }
   0x3   :  { %17 = vsyncadd [#allocation3], 1344  ;;  %s1570_s18 = smov [#allocation5]   ;;  %s1476_s22 = scalar_lea.hbm %s1719_s1, 12288 }
   0x4   :  { %s30_s19 = sshll.u32 %s1570_s18, 4  ;;  %p1477_p0 = scmp.ne.s32.totalorder %s1719_s1, %s1476_s22  ;;  %s31_s19 = int_to_ptr.vmem [resolvable:$true] %s30_s19 }
   0x5   :  { %p1480_p1 = scmp.lt.u32.totalorder %s1476_s22, %s1719_s1 }
   0x7   :  { %p1482_p2 = pnand %p1480_p1, %p1477_p0 }
   0x9   :  { %1485 = shalt.err (!%p1482_p2)
}
   0xa   :  { %s1486_s27 = scalar_lea.vmem %s31_s19, 12288  ;;  %p1491_p4 = scmp.lt.s32.totalorder %s31_s19, %s31_s19 }
   0xb   :  { %p1487_p3 = scmp.ne.s32.totalorder %s31_s19, %s1486_s27  ;;  %p1492_p5 = scmp.lt.s32.totalorder %s1486_s27, %s1486_s27 }
   0xd   :  { %p1493_p6 = por %p1492_p5, %p1491_p4 }
   0xf   :  { %p1494_p7 = pnand %p1493_p6, %p1487_p3 }
  0x11   :  { %1497 = shalt.err (!%p1494_p7)
}
  0x12   :  { %s1571_s28 = smov 128   ;;  %s1572_s29 = smov 8  }
  0x13   :  { %36 = dma.hbm_to_vmem [thread:$0]  %s1719_s1, 12288, %s31_s19, [#allocation6], %s1571_s28, %s1571_s28, %s1572_s29  }
  0x14   :  { %s1573_s7 = smov [#allocation2]   ;;  %s1498_s11 = scalar_lea.hbm %s1718_s0, 192 }
  0x15   :  { %s18_s8 = sshll.u32 %s1573_s7, 4  ;;  %p1499_p8 = scmp.ne.s32.totalorder %s1718_s0, %s1498_s11  ;;  %s19_s8 = int_to_ptr.vmem [resolvable:$true] %s18_s8 }
  0x16   :  { %p1502_p9 = scmp.lt.u32.totalorder %s1498_s11, %s1718_s0 }
  0x18   :  { %p1504_p10 = pnand %p1502_p9, %p1499_p8 }
  0x1a   :  { %1507 = shalt.err (!%p1504_p10)
}
  0x1b   :  { %s1508_s16 = scalar_lea.vmem %s19_s8, 192  ;;  %s1512_s1 = scalar_lea.vmem %s19_s8, 1536 }
  0x1c   :  { %p1509_p11 = scmp.ne.s32.totalorder %s19_s8, %s1508_s16  ;;  %p1513_p12 = scmp.lt.s32.totalorder %s19_s8, %s19_s8 }
  0x1d   :  { %p1514_p13 = scmp.lt.s32.totalorder %s1512_s1, %s1508_s16 }
  0x1f   :  { %p1515_p0 = por %p1514_p13, %p1513_p12 }
  0x21   :  { %p1516_p1 = pnand %p1515_p0, %p1509_p11 }
  0x23   :  { %1519 = shalt.err (!%p1516_p1)
}
  0x24   :  { %s1574_s17 = smov 192   ;;  %s1575_s18 = smov 12  }
  0x25   :  { %24 = dma.hbm_to_vmem [thread:$0]  %s1718_s0, 192, %s19_s8, [#allocation3], %s1574_s17, %s1574_s17, %s1575_s18  }
  0x26   :  { %s1576_s21 = smov [#allocation7]   ;;  %s1520_s25 = scalar_lea.hbm %s1721_s3, 2048 }
  0x27   :  { %s44_s22 = sshll.u32 %s1576_s21, 4  ;;  %p1521_p2 = scmp.ne.s32.totalorder %s1721_s3, %s1520_s25  ;;  %s45_s22 = int_to_ptr.vmem [resolvable:$true] %s44_s22 }
  0x28   :  { %p1524_p3 = scmp.lt.u32.totalorder %s1520_s25, %s1721_s3 }
  0x2a   :  { %p1526_p4 = pnand %p1524_p3, %p1521_p2 }
  0x2c   :  { %1529 = shalt.err (!%p1526_p4)
}
  0x2d   :  { %s1530_s30 = scalar_lea.vmem %s45_s22, 2048  ;;  %p1535_p6 = scmp.lt.s32.totalorder %s45_s22, %s45_s22 }
  0x2e   :  { %p1531_p5 = scmp.ne.s32.totalorder %s45_s22, %s1530_s30  ;;  %p1536_p7 = scmp.lt.s32.totalorder %s1530_s30, %s1530_s30 }
  0x30   :  { %p1537_p8 = por %p1536_p7, %p1535_p6 }
  0x32   :  { %p1538_p9 = pnand %p1537_p8, %p1531_p5 }
  0x34   :  { %1541 = shalt.err (!%p1538_p9)
}
  0x35   :  { %s1577_s0 = smov 64   ;;  %s1578_s6 = smov 4  }
  0x36   :  { %50 = dma.hbm_to_vmem [thread:$0]  %s1721_s3, 2048, %s45_s22, [#allocation6], %s1577_s0, %s1577_s0, %s1578_s6  }
  0x37   :  { %1564 = dma.done.wait [#allocation3], 1536  }
  0x38   :  { %1565 = vsyncadd [#allocation3], 4294965760 }
  0x39   :  { %1566 = dma.done.wait [#allocation6], 14336  }
  0x3a   :  { %1567 = vsyncadd [#allocation6], 4294952960  ;;  %v1300_v0 = vld [vmem:[#allocation5 + $0x104] ss:$8 sps:$4 sm:$0xff]   ;;  %v1302_v1 = vld [vmem:[#allocation5 + $0x100] ss:$8 sps:$4 sm:$0xff]   ;;  %v102_v13 = vlaneseq }
  0x3b   :  { %852 = vmatprep.subr.bf16.mxu0 %v1300_v0  ;;  %v1303_v2 = vld [vmem:[#allocation5 + $0x114] ss:$8 sps:$4 sm:$0xff]   ;;  %v1305_v3 = vld [vmem:[#allocation5 + $0x110] ss:$8 sps:$4 sm:$0xff]   ;;  %v1306_v4 = vld [vmem:[#allocation5 + $0x124] ss:$8 sps:$4 sm:$0xff]  }
  0x3c   :  { %853 = vmatpush1.bf16.msra.mxu0 %v1302_v1  ;;  %v1308_v5 = vld [vmem:[#allocation5 + $0x120] ss:$8 sps:$4 sm:$0xff]   ;;  %v1309_v6 = vld [vmem:[#allocation5 + $0x134] ss:$8 sps:$4 sm:$0xff]   ;;  %v1311_v7 = vld [vmem:[#allocation5 + $0x130] ss:$8 sps:$4 sm:$0xff]  }
  0x3d   :  { %854 = vmatprep.subr.bf16.mxu0 %v1303_v2  ;;  %v1312_v8 = vld [vmem:[#allocation5 + $0x144] ss:$8 sps:$4 sm:$0xff]   ;;  %v1314_v9 = vld [vmem:[#allocation5 + $0x140] ss:$8 sps:$4 sm:$0xff]   ;;  %v1315_v10 = vld [vmem:[#allocation5 + $0x154] ss:$8 sps:$4 sm:$0xff]  }
  0x3e   :  { %v1579_v11 = vmov 1983009808   ;;  %v1317_v14 = vld [vmem:[#allocation5 + $0x150] ss:$8 sps:$4 sm:$0xff]   ;;  %v1318_v15 = vld [vmem:[#allocation5 + $0x164] ss:$8 sps:$4 sm:$0xff]  }
  0x3f   :  { %v100_v12 = vunpack.c.l.s4 %v1579_v11  ;;  %v1345_v16 = vld [vmem:[#allocation5 + $0x4] ss:$8 sps:$4 sm:$0xff]   ;;  %v1649_v18 = vshrl.u32 %v102_v13, 7  ;;  %v1347_v19 = vld [vmem:[#allocation5] ss:$8 sps:$4 sm:$0xff]  }
  0x40   :  { %855 = vmatpush1.bf16.msra.mxu0 %v1305_v3  ;;  %v1320_v20 = vld [vmem:[#allocation5 + $0x160] ss:$8 sps:$4 sm:$0xff]   ;;  %v1321_v21 = vld [vmem:[#allocation5 + $0x174] ss:$8 sps:$4 sm:$0xff]   ;;  %809 = vmatprep.subr.bf16.mxu1 %v1345_v16  ;;  %v1353_v23 = vld [vmem:[#allocation5 + $0x10] ss:$8 sps:$4 sm:$0xff]  }
  0x41   :  { %856 = vmatprep.subr.bf16.mxu0 %v1306_v4  ;;  %v101_v17 = vunpack.c.0.s8 %v100_v12  ;;  %810 = vmatpush1.bf16.msra.mxu1 %v1347_v19  ;;  %v1351_v22 = vld [vmem:[#allocation5 + $0x14] ss:$8 sps:$4 sm:$0xff]   ;;  %v1323_v25 = vld [vmem:[#allocation5 + $0x170] ss:$8 sps:$4 sm:$0xff]   ;;  %v1324_v30 = vld [vmem:[#allocation5 + $0x184] ss:$8 sps:$4 sm:$0xff]  }
  0x42   :  { %811 = vmatprep.subr.bf16.mxu1 %v1351_v22  ;;  %v1354_v26 = vld [vmem:[#allocation2 + $0x4] ss:$12 sps:$4 sm:$0xff]   ;;  %v1356_v27 = vld [vmem:[#allocation2 + $0x1c] ss:$12 sps:$4 sm:$0xff]   ;;  %v1358_v28 = vld [vmem:[#allocation2 + $0x34] ss:$12 sps:$4 sm:$0xff]  }
  0x43   :  { %v1652_v24 = vsub.s32 %v101_v17, %v1649_v18  ;;  %v1360_v29 = vld [vmem:[#allocation2 + $0x4c] ss:$12 sps:$4 sm:$0xff]   ;;  %v1367_v36 = vld [vmem:[#allocation5 + $0x20] ss:$8 sps:$4 sm:$0xff]   ;;  %v1327_v38 = vld [vmem:[#allocation5 + $0x194] ss:$8 sps:$4 sm:$0xff]  }
  0x44   :  { %857 = vmatpush1.bf16.msra.mxu0 %v1308_v5  ;;  %v1365_v35 = vld [vmem:[#allocation5 + $0x24] ss:$8 sps:$4 sm:$0xff]   ;;  %v1326_v37 = vld [vmem:[#allocation5 + $0x180] ss:$8 sps:$4 sm:$0xff]   ;;  %v1371_v41 = vld [vmem:[#allocation5 + $0x34] ss:$8 sps:$4 sm:$0xff]  }
  0x45   :  { %858 = vmatprep.subr.bf16.mxu0 %v1309_v6  ;;  %812 = vmatpush1.bf16.msra.mxu1 %v1353_v23  ;;  %v1655_v31 = vrot.slane %v1354_v26, %v1652_v24  ;;  %v1658_v32 = vrot.slane %v1356_v27, %v1652_v24  ;;  %v1661_v33 = vrot.slane %v1358_v28, %v1652_v24  ;;  %v1373_v43 = vld [vmem:[#allocation5 + $0x30] ss:$8 sps:$4 sm:$0xff]   ;;  %v1377_v45 = vld [vmem:[#allocation5 + $0x44] ss:$8 sps:$4 sm:$0xff]   ;;  %v1379_v47 = vld [vmem:[#allocation5 + $0x40] ss:$8 sps:$4 sm:$0xff]  }
  0x46   :  { %v1664_v34 = vrot.slane %v1360_v29, %v1652_v24  ;;  %813 = vmatprep.subr.bf16.mxu1 %v1365_v35  ;;  %v1329_v44 = vld [vmem:[#allocation5 + $0x190] ss:$8 sps:$4 sm:$0xff]   ;;  %v1330_v46 = vld [vmem:[#allocation5 + $0x1a4] ss:$8 sps:$4 sm:$0xff]   ;;  %v1383_v48 = vld [vmem:[#allocation5 + $0x54] ss:$8 sps:$4 sm:$0xff]  }
  0x47   :  { %v130_v39 = vcombine.high %v1655_v31, %v1658_v32  ;;  %v1332_v49 = vld [vmem:[#allocation5 + $0x1a0] ss:$8 sps:$4 sm:$0xff]   ;;  %v1333_v50 = vld [vmem:[#allocation5 + $0x1b4] ss:$8 sps:$4 sm:$0xff]   ;;  %v1385_v51 = vld [vmem:[#allocation5 + $0x50] ss:$8 sps:$4 sm:$0xff]   ;;  %v129_v4 = vcombine.low %v1655_v31, %v1658_v32 }
  0x48   :  { %859 = vmatpush1.bf16.msra.mxu0 %v1311_v7  ;;  %v184_v40 = vcombine.high %v1661_v33, %v1664_v34  ;;  %v1389_v52 = vld [vmem:[#allocation5 + $0x64] ss:$8 sps:$4 sm:$0xff]   ;;  %v1335_v53 = vld [vmem:[#allocation5 + $0x1b0] ss:$8 sps:$4 sm:$0xff]   ;;  %v1391_v55 = vld [vmem:[#allocation5 + $0x60] ss:$8 sps:$4 sm:$0xff]   ;;  %v183_v5 = vcombine.low %v1661_v33, %v1664_v34 }
  0x49   :  { %860 = vmatprep.subr.bf16.mxu0 %v1312_v8  ;;  %814 = vmatpush1.bf16.msra.mxu1 %v1367_v36  ;;  %v1336_v54 = vld [vmem:[#allocation5 + $0x1c4] ss:$8 sps:$4 sm:$0xff]   ;;  %v1395_v56 = vld [vmem:[#allocation5 + $0x74] ss:$8 sps:$4 sm:$0xff]   ;;  %v1338_v57 = vld [vmem:[#allocation5 + $0x1c0] ss:$8 sps:$4 sm:$0xff]  }
  0x4a   :  { %v218_v42 = vpack.c.bf16 %v184_v40, %v130_v39  ;;  %815 = vmatprep.subr.bf16.mxu1 %v1371_v41  ;;  %v1339_v58 = vld [vmem:[#allocation5 + $0x1d4] ss:$8 sps:$4 sm:$0xff]   ;;  %v1397_v59 = vld [vmem:[#allocation5 + $0x70] ss:$8 sps:$4 sm:$0xff]   ;;  %v1401_v60 = vld [vmem:[#allocation5 + $0x84] ss:$8 sps:$4 sm:$0xff]  }
  0x4b   :  { %v1341_v61 = vld [vmem:[#allocation5 + $0x1d0] ss:$8 sps:$4 sm:$0xff]   ;;  %v1342_v62 = vld [vmem:[#allocation5 + $0x1e4] ss:$8 sps:$4 sm:$0xff]   ;;  %v1403_v63 = vld [vmem:[#allocation5 + $0x80] ss:$8 sps:$4 sm:$0xff]  }
  0x4c   :  { %861 = vmatpush1.bf16.msra.mxu0 %v1314_v9  ;;  %884 = vmatprep.mubr.bf16.mxu0 %v218_v42  ;;  %v1407_v0 = vld [vmem:[#allocation5 + $0x94] ss:$8 sps:$4 sm:$0xff]   ;;  %v1344_v1 = vld [vmem:[#allocation5 + $0x1e0] ss:$8 sps:$4 sm:$0xff]   ;;  %v1409_v3 = vld [vmem:[#allocation5 + $0x90] ss:$8 sps:$4 sm:$0xff]  }
  0x4d   :  { %862 = vmatprep.subr.bf16.mxu0 %v1315_v10  ;;  %816 = vmatpush1.bf16.msra.mxu1 %v1373_v43  ;;  %v1348_v2 = vld [vmem:[#allocation5 + $0x1f4] ss:$8 sps:$4 sm:$0xff]   ;;  %v1413_v6 = vld [vmem:[#allocation5 + $0xa4] ss:$8 sps:$4 sm:$0xff]   ;;  %v1350_v7 = vld [vmem:[#allocation5 + $0x1f0] ss:$8 sps:$4 sm:$0xff]   ;;  %v217_v10 = vpack.c.bf16 %v183_v5, %v129_v4 }
  0x4e   :  { %817 = vmatprep.subr.bf16.mxu1 %v1377_v45  ;;  %v1364_v8 = vld [vmem:[#allocation5 + $0x204] ss:$8 sps:$4 sm:$0xff]   ;;  %v1415_v9 = vld [vmem:[#allocation5 + $0xa0] ss:$8 sps:$4 sm:$0xff]   ;;  %v1419_v11 = vld [vmem:[#allocation5 + $0xb4] ss:$8 sps:$4 sm:$0xff]  }
  0x4f   :  { %v1362_v12 = vld [vmem:[#allocation5 + $0x200] ss:$8 sps:$4 sm:$0xff]   ;;  %v1370_v13 = vld [vmem:[#allocation5 + $0x214] ss:$8 sps:$4 sm:$0xff]   ;;  %v1376_v16 = vld [vmem:[#allocation5 + $0x224] ss:$8 sps:$4 sm:$0xff]  }
  0x50   :  { %863 = vmatpush1.bf16.msra.mxu0 %v1317_v14  ;;  %v1368_v14 = vld [vmem:[#allocation5 + $0x210] ss:$8 sps:$4 sm:$0xff]   ;;  %v1425_v17 = vld [vmem:[#allocation5 + $0xc4] ss:$8 sps:$4 sm:$0xff]   ;;  %v1452_v22 = vld [vmem:[#allocation2 + $0x48] ss:$12 sps:$4 sm:$0xff]  }
  0x51   :  { %864 = vmatprep.subr.bf16.mxu0 %v1318_v15  ;;  %818 = vmatpush1.bf16.msra.mxu1 %v1379_v47  ;;  %v1421_v15 = vld [vmem:[#allocation5 + $0xb0] ss:$8 sps:$4 sm:$0xff]   ;;  %v1449_v19 = vld [vmem:[#allocation2] ss:$12 sps:$4 sm:$0xff]   ;;  %v1431_v27 = vld [vmem:[#allocation5 + $0xd4] ss:$8 sps:$4 sm:$0xff]  }
  0x52   :  { %819 = vmatprep.subr.bf16.mxu1 %v1383_v48  ;;  %v1427_v23 = vld [vmem:[#allocation5 + $0xc0] ss:$8 sps:$4 sm:$0xff]   ;;  %v1382_v31 = vld [vmem:[#allocation5 + $0x234] ss:$8 sps:$4 sm:$0xff]   ;;  %v1433_v32 = vld [vmem:[#allocation5 + $0xd0] ss:$8 sps:$4 sm:$0xff]  }
  0x53   :  { %v1374_v26 = vld [vmem:[#allocation5 + $0x220] ss:$8 sps:$4 sm:$0xff]   ;;  %v1459_v39 = vld [vmem:[#allocation2 + $0x50] ss:$12 sps:$4 sm:$0xff]   ;;  %v1437_v40 = vld [vmem:[#allocation5 + $0xe4] ss:$8 sps:$4 sm:$0xff]  }
  0x54   :  { %865 = vmatpush1.bf16.msra.mxu0 %v1320_v20  ;;  %v1450_v20 = vld [vmem:[#allocation2 + $0x18] ss:$12 sps:$4 sm:$0xff]   ;;  %v1456_v35 = vld [vmem:[#allocation2 + $0x8] ss:$12 sps:$4 sm:$0xff]   ;;  %v1457_v36 = vld [vmem:[#allocation2 + $0x20] ss:$12 sps:$4 sm:$0xff]   ;;  %v1688_v45 = vrot.slane %v1459_v39, %v1652_v24 }
  0x55   :  { %866 = vmatprep.subr.bf16.mxu0 %v1321_v21  ;;  %820 = vmatpush1.bf16.msra.mxu1 %v1385_v51  ;;  %v1451_v21 = vld [vmem:[#allocation2 + $0x30] ss:$12 sps:$4 sm:$0xff]   ;;  %v119_v28 = vrot.slane %v1450_v20, %v1652_v24  ;;  %v1679_v41 = vrot.slane %v1456_v35, %v1652_v24  ;;  %v1682_v42 = vrot.slane %v1457_v36, %v1652_v24  ;;  %v1439_v48 = vld [vmem:[#allocation5 + $0xe0] ss:$8 sps:$4 sm:$0xff]   ;;  %v321_v39 = vsub.s32 0, %v1649_v18 }
  0x56   :  { %821 = vmatprep.subr.bf16.mxu1 %v1389_v52  ;;  %v159_v29 = vrot.slane %v1451_v21, %v1652_v24  ;;  %v1386_v51 = vld [vmem:[#allocation5 + $0x240] ss:$8 sps:$4 sm:$0xff]   ;;  %v1465_v4 = vld [vmem:[#allocation7 + $0x10] sm:$0xff]   ;;  %v1466_v5 = vld [vmem:[#allocation7 + $0x58] sm:$0xff]  }
  0x57   :  { %v148_v47 = vcombine.high %v1679_v41, %v1682_v42  ;;  %v1446_v20 = vld [vmem:[#allocation5 + $0x2e0] ss:$8 sps:$4 sm:$0xff]   ;;  %v1455_v21 = vld [vmem:[#allocation5 + $0x2f4] ss:$8 sps:$4 sm:$0xff]  }
  0x58   :  { %867 = vmatpush1.bf16.msra.mxu0 %v1323_v25  ;;  %v105_v25 = vrot.slane %v1449_v19, %v1652_v24  ;;  %v1448_v19 = vld [vmem:[#allocation5 + $0x2e4] ss:$8 sps:$4 sm:$0xff]  }
  0x59   :  { %868 = vmatprep.subr.bf16.mxu0 %v1324_v30  ;;  %822 = vmatpush1.bf16.msra.mxu1 %v1391_v55  ;;  %v173_v30 = vrot.slane %v1452_v22, %v1652_v24  ;;  %v1392_v55 = vld [vmem:[#allocation5 + $0x250] ss:$8 sps:$4 sm:$0xff]   ;;  %v147_v22 = vcombine.low %v1679_v41, %v1682_v42  ;;  %v325_v41 = vsub.s32 1, %v1649_v18 }
  0x5a   :  { %823 = vmatprep.subr.bf16.mxu1 %v1395_v56  ;;  %v128_v33 = vcombine.high %v105_v25, %v119_v28  ;;  %v1445_v56 = vld [vmem:[#allocation5 + $0xf0] ss:$8 sps:$4 sm:$0xff]  }
  0x5b   :  { %v182_v34 = vcombine.high %v159_v29, %v173_v30 }
  0x5c   :  { %869 = vmatpush1.bf16.msra.mxu0 %v1326_v37  ;;  %v1458_v37 = vld [vmem:[#allocation2 + $0x38] ss:$12 sps:$4 sm:$0xff]  }
  0x5d   :  { %870 = vmatprep.subr.bf16.mxu0 %v1327_v38  ;;  %824 = vmatpush1.bf16.msra.mxu1 %v1397_v59  ;;  %v216_v38 = vpack.c.bf16 %v182_v34, %v128_v33  ;;  %v1685_v43 = vrot.slane %v1458_v37, %v1652_v24  ;;  %v181_v24 = vcombine.low %v159_v29, %v173_v30  ;;  %v1461_v59 = vld [vmem:[#allocation7] sm:$0xff]   ;;  %v1470_v29 = vld [vmem:[#allocation7 + $0x68] sm:$0xff]   ;;  %v1474_v33 = vld [vmem:[#allocation7 + $0x78] sm:$0xff]  }
  0x5e   :  { %825 = vmatprep.subr.bf16.mxu1 %v1401_v60  ;;  %v1471_v30 = vld [vmem:[#allocation7 + $0x28] sm:$0xff]   ;;  %v1475_v34 = vld [vmem:[#allocation7 + $0x38] sm:$0xff]  }
  0x5f   :  { %841 = vmatprep.mubr.bf16.mxu1 %v216_v38 }
  0x60   :  { %871 = vmatpush1.bf16.msra.mxu0 %v1329_v44  ;;  %v1380_v44 = vld [vmem:[#allocation5 + $0x230] ss:$8 sps:$4 sm:$0xff]  }
  0x61   :  { %872 = vmatprep.subr.bf16.mxu0 %v1330_v46  ;;  %826 = vmatpush1.bf16.msra.mxu1 %v1403_v63  ;;  %v1388_v46 = vld [vmem:[#allocation5 + $0x244] ss:$8 sps:$4 sm:$0xff]   ;;  %v1406_v63 = vld [vmem:[#allocation5 + $0x274] ss:$8 sps:$4 sm:$0xff]  }
  0x62   :  { %827 = vmatprep.subr.bf16.mxu1 %v1407_v0  ;;  %v1463_v0 = vld [vmem:[#allocation7 + $0x8] sm:$0xff]  }
  0x64   :  { %873 = vmatpush1.bf16.msra.mxu0 %v1332_v49  ;;  %v202_v49 = vcombine.high %v1685_v43, %v1688_v45 }
  0x65   :  { %874 = vmatprep.subr.bf16.mxu0 %v1333_v50  ;;  %828 = vmatpush1.bf16.msra.mxu1 %v1409_v3  ;;  %v1443_v50 = vld [vmem:[#allocation5 + $0xf4] ss:$8 sps:$4 sm:$0xff]   ;;  %v1412_v3 = vld [vmem:[#allocation5 + $0x284] ss:$8 sps:$4 sm:$0xff]  }
  0x66   :  { %829 = vmatprep.subr.bf16.mxu1 %v1413_v6  ;;  %v220_v52 = vpack.c.bf16 %v202_v49, %v148_v47  ;;  %v1410_v6 = vld [vmem:[#allocation5 + $0x280] ss:$8 sps:$4 sm:$0xff]  }
  0x68   :  { %875 = vmatpush1.bf16.msra.mxu0 %v1335_v53  ;;  %v1394_v53 = vld [vmem:[#allocation5 + $0x254] ss:$8 sps:$4 sm:$0xff]  }
  0x69   :  { %876 = vmatprep.subr.bf16.mxu0 %v1336_v54  ;;  %830 = vmatpush1.bf16.msra.mxu1 %v1415_v9  ;;  %v127_v54 = vcombine.low %v105_v25, %v119_v28  ;;  %v1416_v9 = vld [vmem:[#allocation5 + $0x290] ss:$8 sps:$4 sm:$0xff]   ;;  %v1469_v28 = vld [vmem:[#allocation7 + $0x20] sm:$0xff]  }
  0x6a   :  { %831 = vmatprep.subr.bf16.mxu1 %v1419_v11  ;;  %v1422_v11 = vld [vmem:[#allocation5 + $0x2a0] ss:$8 sps:$4 sm:$0xff]   ;;  %v1453_v25 = vld [vmem:[#allocation5 + $0x2f0] ss:$8 sps:$4 sm:$0xff]  }
  0x6b   :  { %v215_v60 = vpack.c.bf16 %v181_v24, %v127_v54 }
  0x6c   :  { %877 = vmatpush1.bf16.msra.mxu0 %v1338_v57  ;;  %v1460_v57 = vld [vmem:[#allocation7 + $0x40] sm:$0xff]  }
  0x6d   :  { %878 = vmatprep.subr.bf16.mxu0 %v1339_v58  ;;  %832 = vmatpush1.bf16.msra.mxu1 %v1421_v15  ;;  %v1400_v58 = vld [vmem:[#allocation5 + $0x264] ss:$8 sps:$4 sm:$0xff]   ;;  %v1434_v15 = vld [vmem:[#allocation5 + $0x2c0] ss:$8 sps:$4 sm:$0xff]  }
  0x6e   :  { %833 = vmatprep.subr.bf16.mxu1 %v1425_v17  ;;  %v1440_v17 = vld [vmem:[#allocation5 + $0x2d0] ss:$8 sps:$4 sm:$0xff]  }
  0x70   :  { %879 = vmatpush1.bf16.msra.mxu0 %v1341_v61  ;;  %v1462_v61 = vld [vmem:[#allocation7 + $0x48] sm:$0xff]  }
  0x71   :  { %880 = vmatprep.subr.bf16.mxu0 %v1342_v62  ;;  %834 = vmatpush1.bf16.msra.mxu1 %v1427_v23  ;;  %v1398_v62 = vld [vmem:[#allocation5 + $0x260] ss:$8 sps:$4 sm:$0xff]   ;;  %v201_v23 = vcombine.low %v1685_v43, %v1688_v45 }
  0x72   :  { %835 = vmatprep.subr.bf16.mxu1 %v1431_v27  ;;  %v1468_v27 = vld [vmem:[#allocation7 + $0x60] sm:$0xff]  }
  0x74   :  { %881 = vmatpush1.bf16.msra.mxu0 %v1344_v1  ;;  %v1464_v1 = vld [vmem:[#allocation7 + $0x50] sm:$0xff]  }
  0x75   :  { %882 = vmatprep.subr.bf16.mxu0 %v1348_v2  ;;  %836 = vmatpush1.bf16.msra.mxu1 %v1433_v32  ;;  %v1404_v2 = vld [vmem:[#allocation5 + $0x270] ss:$8 sps:$4 sm:$0xff]  }
  0x76   :  { %837 = vmatprep.subr.bf16.mxu1 %v1437_v40  ;;  %v1473_v32 = vld [vmem:[#allocation7 + $0x30] sm:$0xff]   ;;  %v317_v40 = vld [vmem:[%s1720_s2] sm:$0x3] }
  0x77   :  { %v322_v42 = vrot.slane %v317_v40, %v321_v39  ;;  %v326_v43 = vrot.slane %v317_v40, %v325_v41 }
  0x78   :  { %883 = vmatpush1.bf16.msra.mxu0 %v1350_v7  ;;  %v1418_v7 = vld [vmem:[#allocation5 + $0x294] ss:$8 sps:$4 sm:$0xff]  }
  0x79   :  { %895 = vmatprep.subr.bf16.mxu0 %v1364_v8  ;;  %838 = vmatpush1.bf16.msra.mxu1 %v1439_v48  ;;  %v1467_v8 = vld [vmem:[#allocation7 + $0x18] sm:$0xff]  }
  0x7a   :  { %839 = vmatprep.subr.bf16.mxu1 %v1443_v50 }
  0x7b   :  { %885 = vmatmul.mubr.bf16.vlgmr.msra.gmra.mrb[0].mxu0 %v217_v10  ;;  %v1424_v10 = vld [vmem:[#allocation5 + $0x2a4] ss:$8 sps:$4 sm:$0xff]  }
  0x7c   :  { %896 = vmatpush1.bf16.msra.mxu0 %v1362_v12  ;;  %927 = vmatprep.mubr.bf16.mxu0 %v220_v52  ;;  %v1430_v12 = vld [vmem:[#allocation5 + $0x2b4] ss:$8 sps:$4 sm:$0xff]  }
  0x7d   :  { %897 = vmatprep.subr.bf16.mxu0 %v1370_v13  ;;  %840 = vmatpush1.bf16.msra.mxu1 %v1445_v56  ;;  %v1428_v13 = vld [vmem:[#allocation5 + $0x2b0] ss:$8 sps:$4 sm:$0xff]  }
  0x7e   :  { %1253 = vmatprep.subr.bf16.mxu1 %v1460_v57 }
  0x80   :  { %898 = vmatpush1.bf16.msra.mxu0 %v1368_v14  ;;  %842 = vmatmul.mubr.bf16.vlgmr.msra.gmra.mrb[0].mxu1 %v215_v60  ;;  %v1436_v14 = vld [vmem:[#allocation5 + $0x2c4] ss:$8 sps:$4 sm:$0xff]  }
  0x81   :  { %899 = vmatprep.subr.bf16.mxu0 %v1376_v16  ;;  %1254 = vmatpush3.bf16.msra.mxu1 %v1461_v59  ;;  %v1442_v16 = vld [vmem:[#allocation5 + $0x2d4] ss:$8 sps:$4 sm:$0xff]  }
  0x82   :  { %1255 = vmatprep.subr.bf16.mxu1 %v1462_v61  ;;  %v1236_v61 = vld [vmem:[%s1722_s4] ss:$0 sm:$0xff] }
  0x84   :  { %900 = vmatpush1.bf16.msra.mxu0 %v1374_v26  ;;  %v219_v26 = vpack.c.bf16 %v201_v23, %v147_v22 }
  0x85   :  { %901 = vmatprep.subr.bf16.mxu0 %v1382_v31  ;;  %1256 = vmatpush3.bf16.msra.mxu1 %v1463_v0  ;;  %v1472_v31 = vld [vmem:[#allocation7 + $0x70] sm:$0xff]  }
  0x86   :  { %1257 = vmatprep.subr.bf16.mxu1 %v1464_v1 }
  0x88   :  { %902 = vmatpush1.bf16.msra.mxu0 %v1380_v44 }
  0x89   :  { %903 = vmatprep.subr.bf16.mxu0 %v1388_v46  ;;  %1258 = vmatpush3.bf16.msra.mxu1 %v1465_v4 }
  0x8a   :  { %1259 = vmatprep.subr.bf16.mxu1 %v1466_v5 }
  0x8c   :  { %904 = vmatpush1.bf16.msra.mxu0 %v1386_v51 }
  0x8d   :  { %905 = vmatprep.subr.bf16.mxu0 %v1394_v53  ;;  %1260 = vmatpush3.bf16.msra.mxu1 %v1467_v8 }
  0x8e   :  { %1261 = vmatprep.subr.bf16.mxu1 %v1468_v27 }
  0x90   :  { %906 = vmatpush1.bf16.msra.mxu0 %v1392_v55 }
  0x91   :  { %907 = vmatprep.subr.bf16.mxu0 %v1400_v58  ;;  %1262 = vmatpush3.bf16.msra.mxu1 %v1469_v28 }
  0x92   :  { %1263 = vmatprep.subr.bf16.mxu1 %v1470_v29 }
  0x94   :  { %908 = vmatpush1.bf16.msra.mxu0 %v1398_v62 }
  0x95   :  { %909 = vmatprep.subr.bf16.mxu0 %v1406_v63  ;;  %1264 = vmatpush3.bf16.msra.mxu1 %v1471_v30 }
  0x96   :  { %1265 = vmatprep.subr.bf16.mxu1 %v1472_v31 }
  0x98   :  { %910 = vmatpush1.bf16.msra.mxu0 %v1404_v2 }
  0x99   :  { %911 = vmatprep.subr.bf16.mxu0 %v1412_v3  ;;  %1266 = vmatpush3.bf16.msra.mxu1 %v1473_v32 }
  0x9a   :  { %1267 = vmatprep.subr.bf16.mxu1 %v1474_v33 }
  0x9c   :  { %912 = vmatpush1.bf16.msra.mxu0 %v1410_v6 }
  0x9d   :  { %913 = vmatprep.subr.bf16.mxu0 %v1418_v7  ;;  %1268 = vmatpush3.bf16.msra.mxu1 %v1475_v34 }
  0xa0   :  { %914 = vmatpush1.bf16.msra.mxu0 %v1416_v9 }
  0xa1   :  { %915 = vmatprep.subr.bf16.mxu0 %v1424_v10 }
  0xa4   :  { %916 = vmatpush1.bf16.msra.mxu0 %v1422_v11 }
  0xa5   :  { %917 = vmatprep.subr.bf16.mxu0 %v1430_v12 }
  0xa8   :  { %918 = vmatpush1.bf16.msra.mxu0 %v1428_v13 }
  0xa9   :  { %919 = vmatprep.subr.bf16.mxu0 %v1436_v14 }
  0xac   :  { %920 = vmatpush1.bf16.msra.mxu0 %v1434_v15 }
  0xad   :  { %921 = vmatprep.subr.bf16.mxu0 %v1442_v16 }
  0xb0   :  { %922 = vmatpush1.bf16.msra.mxu0 %v1440_v17 }
  0xb1   :  { %923 = vmatprep.subr.bf16.mxu0 %v1448_v19 }
  0xb4   :  { %924 = vmatpush1.bf16.msra.mxu0 %v1446_v20 }
  0xb5   :  { %925 = vmatprep.subr.bf16.mxu0 %v1455_v21 }
  0xb8   :  { %926 = vmatpush1.bf16.msra.mxu0 %v1453_v25 }
  0xbb   :  { %928 = vmatmul.mubr.bf16.vlgmr.msra.gmra.mrb[0].mxu0 %v219_v26 }
 0x153   :  { %v843_v35 = vpop.f32.mrb[0].mxu1 }
 0x154   :  { %v845_v36 = vpop.f32.mrb[1].mxu1  ;;  %v844_v44 = vadd.f32 %v843_v35, %v322_v42 }
 0x155   :  { %v847_v37 = vpop.f32.mrb[2].mxu1  ;;  %v846_v45 = vadd.f32 %v845_v36, %v326_v43 }
 0x156   :  { %v849_v38 = vpop.f32.mrb[3].mxu1  ;;  %v848_v47 = vadd.f32 %v847_v37, %v322_v42 }
 0x157   :  { %v850_v50 = vadd.f32 %v849_v38, %v326_v43 }
 0x18e   :  { %v929_v46 = vpop.f32.mrb[0].mxu0 }
 0x18f   :  { %v1276_v48 = vadd.f32 %v929_v46, %v844_v44  ;;  %v931_v49 = vpop.f32.mrb[1].mxu0 }
 0x190   :  { %v1278_v51 = vadd.f32 %v931_v49, %v846_v45  ;;  %v933_v52 = vpop.f32.mrb[2].mxu0 }
 0x191   :  { %v1280_v53 = vadd.f32 %v933_v52, %v848_v47  ;;  %v935_v54 = vpop.f32.mrb[3].mxu0  ;;  %v938_v55 = vmax.f32 %v1276_v48, 0.0 }
 0x192   :  { %v1282_v24 = vadd.f32 %v935_v54, %v850_v50  ;;  %v939_v57 = vmax.f32 %v1278_v51, 0.0 }
 0x193   :  { %v940_v56 = vmax.f32 %v1280_v53, 0.0 }
 0x194   :  { %v941_v58 = vmax.f32 %v1282_v24, 0.0 }
 0x195   :  { %v942_v59 = vpack.c.bf16 %v940_v56, %v938_v55 }
 0x196   :  { %v943_v18 = vpack.c.bf16 %v941_v58, %v939_v57 }
 0x198   :  { %1111 = vmatprep.mubr.bf16.mxu1 %v943_v18 }
 0x199   :  { %1112 = vmatmul.mubr.bf16.vlgmr.msra.gmra.mrb[4].mxu1 %v942_v59 }
 0x26c   :  { %v1269_v60 = vpop.f32.mrb[4].mxu1 }
 0x26d   :  { %v1270_v62 = vpop.f32.mrb[5].mxu1 }
 0x26e   :  { %v1271_v63 = vadd.f32 %v1270_v62, %v1269_v60  ;;  %v1272_v0 = vpop.f32.mrb[6].mxu1 }
 0x26f   :  { %v1273_v1 = vpop.f32.mrb[7].mxu1 }
 0x270   :  { %v1114_v2 = vadd.f32 %v1271_v63, %v1236_v61  ;;  %v1274_v3 = vadd.f32 %v1273_v1, %v1272_v0 }
 0x272   :  { %1120 = vst [vmem:[#allocation8] sm:$0xff] %v1114_v2  ;;  %v1117_v4 = vadd.f32 %v1274_v3, %v1236_v61 }
 0x274   :  { %1121 = vst [vmem:[#allocation8 + $0x8] sm:$0xff] %v1117_v4 }
 0x275   :  { %1126 = vsyncadd [#allocation4], 224  ;;  %s1580_s11 = smov [#allocation8]  }
 0x276   :  { %s1127_s12 = sshll.u32 %s1580_s11, 4  ;;  %s1128_s12 = int_to_ptr.vmem [resolvable:$true] %s1127_s12 }
 0x277   :  { %s1542_s13 = scalar_lea.vmem %s1128_s12, 32  ;;  %s1546_s14 = scalar_lea.vmem %s1128_s12, 256 }
 0x278   :  { %p1543_p10 = scmp.ne.s32.totalorder %s1128_s12, %s1542_s13  ;;  %p1547_p11 = scmp.lt.s32.totalorder %s1128_s12, %s1128_s12 }
 0x279   :  { %p1548_p12 = scmp.lt.s32.totalorder %s1546_s14, %s1542_s13 }
 0x27b   :  { %p1549_p13 = por %p1548_p12, %p1547_p11 }
 0x27d   :  { %p1550_p0 = pnand %p1549_p13, %p1543_p10 }
 0x27f   :  { %1553 = shalt.err (!%p1550_p0)
}
 0x280   :  { %s1554_s16 = scalar_lea.hbm %s1723_s5, 32 }
 0x281   :  { %p1555_p1 = scmp.ne.s32.totalorder %s1723_s5, %s1554_s16  ;;  %p1558_p2 = scmp.lt.u32.totalorder %s1554_s16, %s1723_s5 }
 0x283   :  { %p1560_p3 = pnand %p1558_p2, %p1555_p1 }
 0x285   :  { %1563 = shalt.err (!%p1560_p3)
}
 0x286   :  { %s1581_s20 = smov 32   ;;  %s1582_s21 = smov 2  }
 0x287   :  { %1133 = dma.vmem_to_hbm [thread:$0]  %s1128_s12, 32, %s1723_s5, [#allocation4], %s1581_s20, %s1581_s20, %s1582_s21  }
 0x288   :  { %1568 = dma.done.wait [#allocation4], 256  }
 0x289   :  { %1569 = vsyncadd [#allocation4], 4294967040 }
 0x28a   :  { %1137 = vsyncpa [#allocation3], 1 }
 0x28b   :  { %1138 = vsyncpa [#allocation6], 1 }
 0x28c   :  { %1139 = vsyncpa [#allocation4], 1 }

</bundles_post_ra>
